<compile_context>
chip_gen: v6e
topology: v6e:2x2x1
jax: 0.10.0
libtpu: 0.0.40
codegen_flags: <defaults>
</compile_context>

<pallas_src>
import jax
import jax.numpy as jnp
from jax.experimental import pallas as pl
from jax.experimental.pallas import tpu as pltpu


def _round_up(x, m):
    return (x + m - 1) // m * m


# ----------------------------------------------------------------------------
# Kernels
# ----------------------------------------------------------------------------
def _ffn_kernel_acc_out(x_ref, w1_ref, b1_ref, w2_ref, b2_ref, o_ref):
    """linear1 -> ReLU -> linear2, accumulating directly into the f32 output."""
    f = pl.program_id(1)

    @pl.when(f == 0)
    def _init():
        o_ref[...] = jnp.zeros_like(o_ref)

    # First matmul on the MXU; bias + ReLU in f32 on the VPU.
    h = jnp.dot(x_ref[...], w1_ref[...], preferred_element_type=jnp.float32)
    h = jnp.maximum(h + b1_ref[...], 0.0)

    # Second matmul, accumulated across ffn tiles into the resident output tile.
    o_ref[...] += jnp.dot(h.astype(w2_ref.dtype), w2_ref[...],
                          preferred_element_type=jnp.float32)

    @pl.when(f == pl.num_programs(1) - 1)
    def _finalize():
        o_ref[...] = o_ref[...] + b2_ref[...]   # b2 added exactly once per tile


def _ffn_kernel_scratch(x_ref, w1_ref, b1_ref, w2_ref, b2_ref, o_ref, acc_ref):
    """Same computation, but with an f32 scratch accumulator (non-f32 outputs)."""
    f = pl.program_id(1)

    @pl.when(f == 0)
    def _init():
        acc_ref[...] = jnp.zeros_like(acc_ref)

    h = jnp.dot(x_ref[...], w1_ref[...], preferred_element_type=jnp.float32)
    h = jnp.maximum(h + b1_ref[...], 0.0)
    acc_ref[...] += jnp.dot(h.astype(w2_ref.dtype), w2_ref[...],
                            preferred_element_type=jnp.float32)

    @pl.when(f == pl.num_programs(1) - 1)
    def _finalize():
        o_ref[...] = (acc_ref[...] + b2_ref[...]).astype(o_ref.dtype)


# ----------------------------------------------------------------------------
# Hardware-aware configuration
# ----------------------------------------------------------------------------
def _tpu_config():
    """Returns (tile_align, megacore, vmem_budget_bytes, vmem_limit_cap)."""
    vmem_bytes = None
    try:
        vmem_bytes = int(pltpu.get_tpu_info().vmem_capacity_bytes)
    except Exception:
        vmem_bytes = None

    kind = ""
    try:
        kind = jax.devices()[0].device_kind.lower()
    except Exception:
        pass

    if vmem_bytes is None:
        vmem_bytes = 64 * 1024 * 1024 if "v7" in kind else 128 * 1024 * 1024

    # v6e/v7x MXUs are 2x256x256 -> 256-aligned tiles keep them fully occupied.
    align = 256 if ("v6" in kind or "v7" in kind) else 128
    # v7x has 2 TensorCores per chip sharing the "parallel" grid axis.
    megacore = "v7" in kind

    if vmem_bytes <= 64 * 1024 * 1024:
        # v7x: leave headroom out of the 64 MiB VMEM for pipelining / scratch.
        budget = 40 * 1024 * 1024
        limit_cap = 50 * 1024 * 1024
    else:
        # v5e / v6e: 128 MiB physical VMEM — be aggressive.
        budget = 96 * 1024 * 1024
        limit_cap = 110 * 1024 * 1024
    return align, megacore, budget, limit_cap


def _choose_tiles(M, dim_p, ffn, itemsize, budget_bytes, align, megacore):
    """Pick MXU-friendly (TM, TF); shrink TF first, TM only as a last resort."""
    # Large TM = fewer full w1/w2 passes over HBM and fewer grid-step overheads.
    tm_cap = 2048 if dim_p <= 512 else (1024 if dim_p <= 1024 else 512)
    TM = min(tm_cap, _round_up(M, 8))
    if megacore and M >= 2 * align:
        # Keep at least two row tiles so both v7x TensorCores are busy.
        TM = min(TM, _round_up(-(-M // 2), 8))
    TF = min(512, _round_up(ffn, align))

    def est(tm, tf):
        # Double-buffered x / w1 / b1 / w2 / b2 / out tiles + f32 acc worst case.
        dbl = 2 * (tm * dim_p + dim_p * tf + tf + tf * dim_p + dim_p + tm * dim_p)
        return dbl * itemsize + tm * dim_p * 4

    while est(TM, TF) > budget_bytes and (TF > align or TM > 128):
        if TF > align:
            TF = max(align, (TF // 2 // align) * align)
        elif TM > 128:
            TM = max(128, _round_up(TM // 2, 8))
        else:
            break
    return TM, TF, est(TM, TF)


# ----------------------------------------------------------------------------
# Wrapper
# ----------------------------------------------------------------------------
def feed_forward(x, w1, b1, w2, b2, *, compute_dtype=None):
    """x: [B, T, dim].  w1: [dim, ffn] (transposed vs PyTorch's [out, in]),
    b1: [ffn], w2: [ffn, dim], b2: [dim].

    compute_dtype: optionally cast x/w1/w2 (e.g. jnp.bfloat16) before the MXU;
    accumulation stays f32.  Default None keeps the input dtype bit-exact path.
    """
    B, T, dim = x.shape
    ffn = w1.shape[1]
    M = B * T
    out_dtype = x.dtype

    if compute_dtype is not None:
        x = x.astype(compute_dtype)
        w1 = w1.astype(compute_dtype)
        w2 = w2.astype(compute_dtype)
    itemsize = jnp.dtype(x.dtype).itemsize

    align, megacore, budget, limit_cap = _tpu_config()

    dim_p = _round_up(dim, 128)                      # lane-dense output stores
    TM, TF, est = _choose_tiles(M, dim_p, ffn, itemsize, budget, align, megacore)
    M_p = _round_up(M, TM)
    ffn_p = _round_up(ffn, TF)

    # Zero-padding is exact for linear -> ReLU -> linear; pads are skipped
    # entirely (no HBM copy) when shapes are already aligned.
    def _maybe_pad(a, pads):
        return a if all(p == (0, 0) for p in pads) else jnp.pad(a, pads)

    x2d = _maybe_pad(x.reshape(M, dim), ((0, M_p - M), (0, dim_p - dim)))
    w1_p = _maybe_pad(w1, ((0, dim_p - dim), (0, ffn_p - ffn)))
    b1_p = _maybe_pad(b1.reshape(1, ffn).astype(jnp.float32),
                      ((0, 0), (0, ffn_p - ffn)))
    w2_p = _maybe_pad(w2, ((0, ffn_p - ffn), (0, dim_p - dim)))
    b2_p = _maybe_pad(b2.reshape(1, dim).astype(jnp.float32),
                      ((0, 0), (0, dim_p - dim)))

    grid = (M_p // TM, ffn_p // TF)

    in_specs = [
        pl.BlockSpec((TM, dim_p), lambda i, f: (i, 0)),    # x row tile (resident)
        pl.BlockSpec((dim_p, TF), lambda i, f: (0, f)),    # w1 ffn tile
        pl.BlockSpec((1, TF), lambda i, f: (0, f)),        # b1 ffn tile
        pl.BlockSpec((TF, dim_p), lambda i, f: (f, 0)),    # w2 ffn tile
        pl.BlockSpec((1, dim_p), lambda i, f: (0, 0)),     # b2 (resident)
    ]
    out_spec = pl.BlockSpec((TM, dim_p), lambda i, f: (i, 0))

    cost = pl.CostEstimate(
        flops=4 * M_p * dim_p * ffn_p,
        transcendentals=0,
        bytes_accessed=itemsize * (2 * M_p * dim_p + dim_p * ffn_p
                                   + ffn_p * dim_p) + 4 * (ffn_p + dim_p),
    )
    vmem_limit = int(min(max(2 * est, 16 * 1024 * 1024), limit_cap))

    if jnp.dtype(out_dtype) == jnp.float32:
        # Accumulate directly into the f32 output tile: no scratch, no final copy.
        kernel = _ffn_kernel_acc_out
        scratch_shapes = []
        kernel_out_dtype = jnp.float32
    else:
        kernel = _ffn_kernel_scratch
        scratch_shapes = [pltpu.VMEM((TM, dim_p), jnp.float32)]
        kernel_out_dtype = out_dtype

    out = pl.pallas_call(
        kernel,
        out_shape=jax.ShapeDtypeStruct((M_p, dim_p), kernel_out_dtype),
        grid_spec=pltpu.PrefetchScalarGridSpec(
            num_scalar_prefetch=0,
            grid=grid,
            in_specs=in_specs,
            out_specs=out_spec,
            scratch_shapes=scratch_shapes,
        ),
        compiler_params=pltpu.CompilerParams(
            dimension_semantics=("parallel", "arbitrary"),
            vmem_limit_bytes=vmem_limit,
        ),
        cost_estimate=cost,
    )(x2d, w1_p, b1_p, w2_p, b2_p)

    if M_p != M or dim_p != dim:
        out = out[:M, :dim]
    return out.astype(out_dtype).reshape(B, T, dim)


# ----------------------------------------------------------------------------
# Reference + test harness
# ----------------------------------------------------------------------------
def _ref_feed_forward(x, w1, b1, w2, b2):
    hp = jax.lax.Precision.HIGHEST
    h = jnp.maximum(jnp.einsum("btd,df->btf", x, w1, precision=hp) + b1, 0.0)
    return jnp.einsum("btf,fd->btd", h, w2, precision=hp) + b2


def _make_params(key, dim, ffn_dim):
    k_w1, k_b1, k_w2, k_b2 = jax.random.split(key, 4)
    # nn.Linear-style init U(-1/sqrt(in), 1/sqrt(in)); weights stored as [in, out].
    bound1 = 1.0 / (dim ** 0.5)
    bound2 = 1.0 / (ffn_dim ** 0.5)
    w1 = jax.random.uniform(k_w1, (dim, ffn_dim), jnp.float32, -bound1, bound1)
    b1 = jax.random.uniform(k_b1, (ffn_dim,), jnp.float32, -bound1, bound1)
    w2 = jax.random.uniform(k_w2, (ffn_dim, dim), jnp.float32, -bound2, bound2)
    b2 = jax.random.uniform(k_b2, (dim,), jnp.float32, -bound2, bound2)
    return w1, b1, w2, b2


if __name__ == "__main__":
    key = jax.random.PRNGKey(0)

    # --- small spec-sized test (dim=32, ffn=128) ---
    B, T, dim, ffn_dim = 2, 8, 32, 128
    k_p, k_x, key = jax.random.split(key, 3)
    w1, b1, w2, b2 = _make_params(k_p, dim, ffn_dim)
    x = jax.random.normal(k_x, (B, T, dim), jnp.float32)

    out = feed_forward(x, w1, b1, w2, b2)
    jax.block_until_ready(out)
    ref = _ref_feed_forward(x, w1, b1, w2, b2)
    assert out.shape == (B, T, dim)
    assert jnp.allclose(out, ref, atol=1e-5, rtol=1e-5), "mismatch vs reference (small)"

    # --- multi-tile test: exercises ffn accumulation across ffn grid steps ---
    B2, T2, dim2, ffn2 = 2, 128, 128, 1024
    k_p2, k_x2, key = jax.random.split(key, 3)
    w1b, b1b, w2b, b2b = _make_params(k_p2, dim2, ffn2)
    x2 = jax.random.normal(k_x2, (B2, T2, dim2), jnp.float32)

    out2 = feed_forward(x2, w1b, b1b, w2b, b2b)
    jax.block_until_ready(out2)
    ref2 = _ref_feed_forward(x2, w1b, b1b, w2b, b2b)
    assert out2.shape == (B2, T2, dim2)
    assert jnp.allclose(out2, ref2, atol=1e-4, rtol=1e-4), "mismatch vs reference (tiled)"

    print("KERNEL_OK")
</pallas_src>

<mosaic_0001>
module attributes {stable_mosaic.version = 11 : i64} {
  func.func @_ffn_kernel_acc_out(%arg0: i32, %arg1: i32, %arg2: memref<16x128xf32, #tpu.memory_space<vmem>>, %arg3: memref<128x128xf32, #tpu.memory_space<vmem>>, %arg4: memref<1x128xf32, #tpu.memory_space<vmem>>, %arg5: memref<128x128xf32, #tpu.memory_space<vmem>>, %arg6: memref<1x128xf32, #tpu.memory_space<vmem>>, %arg7: memref<16x128xf32, #tpu.memory_space<vmem>>) attributes {dimension_semantics = [#tpu.dimension_semantics<parallel>, #tpu.dimension_semantics<arbitrary>], iteration_bounds = array<i64: 1, 1>, scalar_prefetch = 0 : i64, scratch_operands = 0 : i64, tpu.core_type = #tpu.core_type<tc>, window_params = [{transform_indices = @transform_0, window_bounds = array<i64: 16, 128>}, {transform_indices = @transform_1, window_bounds = array<i64: 128, 128>}, {transform_indices = @transform_2, window_bounds = array<i64: 1, 128>}, {transform_indices = @transform_3, window_bounds = array<i64: 128, 128>}, {pipeline_mode = #tpu.pipeline_mode<synchronous>, transform_indices = @transform_4, window_bounds = array<i64: 1, 128>}, {transform_indices = @transform_5, window_bounds = array<i64: 16, 128>}]} {
    %c0_i32 = arith.constant 0 : i32
    %0 = arith.cmpi eq, %arg1, %c0_i32 : i32
    %1 = arith.extui %0 : i1 to i32
    %c0_i32_0 = arith.constant 0 : i32
    %2 = arith.cmpi ne, %1, %c0_i32_0 : i32
    scf.if %2 {
      %cst_16 = arith.constant 0.000000e+00 : f32
      %19 = vector.broadcast %cst_16 : f32 to vector<16x128xf32>
      %c0_17 = arith.constant 0 : index
      %c0_18 = arith.constant 0 : index
      %20 = vector.load %arg7[%c0_17, %c0_18] : memref<16x128xf32, #tpu.memory_space<vmem>>, vector<16x128xf32>
      tpu.vector_store %arg7[%c0_17, %c0_18], %19 {strides = array<i32>} : memref<16x128xf32, #tpu.memory_space<vmem>>, vector<16x128xf32>,
    } else {
    }
    %c0 = arith.constant 0 : index
    %c0_1 = arith.constant 0 : index
    %3 = vector.load %arg2[%c0, %c0_1] : memref<16x128xf32, #tpu.memory_space<vmem>>, vector<16x128xf32>
    %c0_2 = arith.constant 0 : index
    %c0_3 = arith.constant 0 : index
    %4 = vector.load %arg3[%c0_2, %c0_3] : memref<128x128xf32, #tpu.memory_space<vmem>>, vector<128x128xf32>
    %cst = arith.constant dense<0.000000e+00> : vector<16x128xf32>
    %5 = tpu.matmul %3, %4, %cst {dimension_numbers = #tpu.dot_dimension_numbers<[1], [0], [0], [1], [0, 0, 1, 1], [], []>} : vector<16x128xf32>, vector<128x128xf32>, vector<16x128xf32> -> vector<16x128xf32>
    %c0_4 = arith.constant 0 : index
    %c0_5 = arith.constant 0 : index
    %6 = vector.load %arg4[%c0_4, %c0_5] : memref<1x128xf32, #tpu.memory_space<vmem>>, vector<1x128xf32>
    %7 = vector.broadcast %6 : vector<1x128xf32> to vector<16x128xf32>
    %8 = arith.addf %5, %7 : vector<16x128xf32>
    %cst_6 = arith.constant 0.000000e+00 : f32
    %9 = vector.broadcast %cst_6 : f32 to vector<16x128xf32>
    %10 = arith.maximumf %8, %9 : vector<16x128xf32>
    %c0_7 = arith.constant 0 : index
    %c0_8 = arith.constant 0 : index
    %11 = vector.load %arg7[%c0_7, %c0_8] : memref<16x128xf32, #tpu.memory_space<vmem>>, vector<16x128xf32>
    %c0_9 = arith.constant 0 : index
    %c0_10 = arith.constant 0 : index
    %12 = vector.load %arg5[%c0_9, %c0_10] : memref<128x128xf32, #tpu.memory_space<vmem>>, vector<128x128xf32>
    %cst_11 = arith.constant dense<0.000000e+00> : vector<16x128xf32>
    %13 = tpu.matmul %10, %12, %cst_11 {dimension_numbers = #tpu.dot_dimension_numbers<[1], [0], [0], [1], [0, 0, 1, 1], [], []>} : vector<16x128xf32>, vector<128x128xf32>, vector<16x128xf32> -> vector<16x128xf32>
    %14 = arith.addf %11, %13 : vector<16x128xf32>
    %c0_12 = arith.constant 0 : index
    %c0_13 = arith.constant 0 : index
    %15 = vector.load %arg7[%c0_12, %c0_13] : memref<16x128xf32, #tpu.memory_space<vmem>>, vector<16x128xf32>
    tpu.vector_store %arg7[%c0_12, %c0_13], %14 {strides = array<i32>} : memref<16x128xf32, #tpu.memory_space<vmem>>, vector<16x128xf32>,
    %c0_i32_14 = arith.constant 0 : i32
    %16 = arith.cmpi eq, %arg1, %c0_i32_14 : i32
    %17 = arith.extui %16 : i1 to i32
    %c0_i32_15 = arith.constant 0 : i32
    %18 = arith.cmpi ne, %17, %c0_i32_15 : i32
    scf.if %18 {
      %c0_16 = arith.constant 0 : index
      %c0_17 = arith.constant 0 : index
      %19 = vector.load %arg7[%c0_16, %c0_17] : memref<16x128xf32, #tpu.memory_space<vmem>>, vector<16x128xf32>
      %c0_18 = arith.constant 0 : index
      %c0_19 = arith.constant 0 : index
      %20 = vector.load %arg6[%c0_18, %c0_19] : memref<1x128xf32, #tpu.memory_space<vmem>>, vector<1x128xf32>
      %21 = vector.broadcast %20 : vector<1x128xf32> to vector<16x128xf32>
      %22 = arith.addf %19, %21 : vector<16x128xf32>
      %c0_20 = arith.constant 0 : index
      %c0_21 = arith.constant 0 : index
      %23 = vector.load %arg7[%c0_20, %c0_21] : memref<16x128xf32, #tpu.memory_space<vmem>>, vector<16x128xf32>
      tpu.vector_store %arg7[%c0_20, %c0_21], %22 {strides = array<i32>} : memref<16x128xf32, #tpu.memory_space<vmem>>, vector<16x128xf32>,
    } else {
    }
    return
  }
  func.func @transform_0(%arg0: i32, %arg1: i32) -> (i32, i32) {
    %c0_i32 = arith.constant 0 : i32
    %c0_i32_0 = arith.constant 0 : i32
    return %arg0, %c0_i32 : i32, i32
  }
  func.func @transform_1(%arg0: i32, %arg1: i32) -> (i32, i32) {
    %c0_i32 = arith.constant 0 : i32
    %c0_i32_0 = arith.constant 0 : i32
    return %c0_i32, %arg1 : i32, i32
  }
  func.func @transform_2(%arg0: i32, %arg1: i32) -> (i32, i32) {
    %c0_i32 = arith.constant 0 : i32
    %c0_i32_0 = arith.constant 0 : i32
    return %c0_i32, %arg1 : i32, i32
  }
  func.func @transform_3(%arg0: i32, %arg1: i32) -> (i32, i32) {
    %c0_i32 = arith.constant 0 : i32
    %c0_i32_0 = arith.constant 0 : i32
    return %arg1, %c0_i32 : i32, i32
  }
  func.func @transform_4(%arg0: i32, %arg1: i32) -> (i32, i32) {
    %c0_i32 = arith.constant 0 : i32
    %c0_i32_0 = arith.constant 0 : i32
    %c0_i32_1 = arith.constant 0 : i32
    return %c0_i32, %c0_i32_0 : i32, i32
  }
  func.func @transform_5(%arg0: i32, %arg1: i32) -> (i32, i32) {
    %c0_i32 = arith.constant 0 : i32
    %c0_i32_0 = arith.constant 0 : i32
    return %arg0, %c0_i32 : i32, i32
  }
}

</mosaic_0001>

<bundles_post_ra>
// kernel: tpu_custom_call.1
= control target key start
LH: loop header
LB: loop body
LE: loop exit
PB: predicated region body
PF: predicated region fallthrough
CT: control target
= control target key end

     0   :  { %10 = vsyncpa [#allocation3], 0  ;;  %s568_s0 = inlined_call_operand.hbm [shape: f32[16,128], index: 0, kind: input, shape index: {}]   ;;  %s569_s1 = inlined_call_operand.hbm [shape: f32[128,128], index: 1, kind: input, shape index: {}]   ;;  %s570_s2 = inlined_call_operand.vmem [shape: f32[1,128], index: 2, kind: input, shape index: {}]   ;;  %s571_s3 = inlined_call_operand.hbm [shape: f32[128,128], index: 3, kind: input, shape index: {}]   ;;  %s572_s4 = inlined_call_operand.vmem [shape: f32[1,128], index: 4, kind: input, shape index: {}]   ;;  %s573_s5 = inlined_call_operand.hbm [shape: f32[16,128], index: 5, kind: output, shape index: {}]  }
   0x1   :  { %11 = vsyncpa [#allocation6], 0 }
   0x2   :  { %12 = vsyncpa [#allocation4], 0  ;;  %s502_s18 = smov [#allocation5]   ;;  %s503_s20 = smov [#allocation2]  }
   0x3   :  { %s30_s19 = sshll.u32 %s502_s18, 4  ;;  %s18_s21 = sshll.u32 %s503_s20, 4  ;;  %s31_s19 = int_to_ptr.vmem [resolvable:$true] %s30_s19  ;;  %s19_s21 = int_to_ptr.vmem [resolvable:$true] %s18_s21 }
   0x4   :  { %s424_s22 = scalar_lea.vmem %s31_s19, 2048  ;;  %p429_p1 = scmp.lt.s32.totalorder %s31_s19, %s31_s19 }
   0x5   :  { %p425_p0 = scmp.ne.s32.totalorder %s31_s19, %s424_s22  ;;  %p430_p2 = scmp.lt.s32.totalorder %s424_s22, %s424_s22 }
   0x7   :  { %p431_p3 = por %p430_p2, %p429_p1 }
   0x9   :  { %p432_p4 = pnand %p431_p3, %p425_p0 }
   0xb   :  { %435 = shalt.err (!%p432_p4)
}
   0xc   :  { %s504_s23 = smov 128   ;;  %s505_s24 = smov 8  }
   0xd   :  { %36 = dma.hbm_to_vmem [thread:$0]  %s569_s1, 2048, %s31_s19, [#allocation6], %s504_s23, %s504_s23, %s505_s24  }
   0xe   :  { %s444_s27 = scalar_lea.vmem %s19_s21, 256  ;;  %p449_p6 = scmp.lt.s32.totalorder %s19_s21, %s19_s21 }
   0xf   :  { %p445_p5 = scmp.ne.s32.totalorder %s19_s21, %s444_s27  ;;  %p450_p7 = scmp.lt.s32.totalorder %s444_s27, %s444_s27 }
  0x11   :  { %p451_p8 = por %p450_p7, %p449_p6 }
  0x13   :  { %p452_p9 = pnand %p451_p8, %p445_p5 }
  0x15   :  { %455 = shalt.err (!%p452_p9)
}
  0x16   :  { %24 = dma.hbm_to_vmem [thread:$0]  %s568_s0, 256, %s19_s21, [#allocation3], %s504_s23, %s504_s23, %s505_s24  }
  0x17   :  { %s506_s30 = smov [#allocation7]  }
  0x18   :  { %s44_s6 = sshll.u32 %s506_s30, 4  ;;  %s45_s6 = int_to_ptr.vmem [resolvable:$true] %s44_s6 }
  0x19   :  { %s464_s7 = scalar_lea.vmem %s45_s6, 2048  ;;  %p469_p11 = scmp.lt.s32.totalorder %s45_s6, %s45_s6 }
  0x1a   :  { %p465_p10 = scmp.ne.s32.totalorder %s45_s6, %s464_s7  ;;  %p470_p12 = scmp.lt.s32.totalorder %s464_s7, %s464_s7 }
  0x1c   :  { %p471_p13 = por %p470_p12, %p469_p11 }
  0x1e   :  { %p472_p0 = pnand %p471_p13, %p465_p10 }
  0x20   :  { %475 = shalt.err (!%p472_p0)
}
  0x21   :  { %50 = dma.hbm_to_vmem [thread:$0]  %s571_s3, 2048, %s45_s6, [#allocation6], %s504_s23, %s504_s23, %s505_s24  }
  0x22   :  { %496 = dma.done.wait [#allocation3], 256  }
  0x23   :  { %497 = vsyncadd [#allocation3], 4294967040 }
  0x24   :  { %498 = dma.done.wait [#allocation6], 4096  }
  0x25   :  { %499 = vsyncadd [#allocation6], 4294963200  ;;  %v85_v0 = vld [vmem:[#allocation5 + $0x78] sm:$0xff]  ;;  %v84_v1 = vld [vmem:[#allocation5 + $0x70] sm:$0xff]  ;;  %s507_s11 = smov [#allocation8]  }
  0x26   :  { %339 = vmatprep.subr.mxu0 %v85_v0  ;;  %v83_v2 = vld [vmem:[#allocation5 + $0x68] sm:$0xff]  ;;  %v82_v3 = vld [vmem:[#allocation5 + $0x60] sm:$0xff]  ;;  %v68_v4 = vld [vmem:[#allocation2] sm:$0xff]  ;;  %s288_s12 = sshll.u32 %s507_s11, 4  ;;  %s289_s12 = int_to_ptr.vmem [resolvable:$true] %s288_s12 }
  0x27   :  { %340 = vmatpush3.msra.mxu0 %v85_v0  ;;  %v81_v5 = vld [vmem:[#allocation5 + $0x58] sm:$0xff]  ;;  %371 = vmatprep.mubr.f32.mxu0 %v68_v4  ;;  %v186_v7 = vld [vmem:[#allocation7 + $0x70] sm:$0xff]  ;;  %v185_v9 = vld [vmem:[#allocation7 + $0x68] sm:$0xff]  ;;  %p481_p2 = scmp.lt.s32.totalorder %s289_s12, %s289_s12 }
  0x28   :  { %341 = vmatprep.subr.mxu0 %v84_v1  ;;  %v187_v6 = vld [vmem:[#allocation7 + $0x78] sm:$0xff]  ;;  %v80_v8 = vld [vmem:[#allocation5 + $0x50] sm:$0xff]  ;;  %v79_v10 = vld [vmem:[#allocation5 + $0x48] sm:$0xff] }
  0x29   :  { %342 = vmatpush3.msra.mxu0 %v84_v1  ;;  %374 = vmatprep.subr.mxu1 %v187_v6  ;;  %v184_v11 = vld [vmem:[#allocation7 + $0x60] sm:$0xff]  ;;  %v183_v13 = vld [vmem:[#allocation7 + $0x58] sm:$0xff]  ;;  %v182_v15 = vld [vmem:[#allocation7 + $0x50] sm:$0xff] }
  0x2a   :  { %343 = vmatprep.subr.mxu0 %v83_v2  ;;  %375 = vmatpush3.msra.mxu1 %v187_v6  ;;  %v78_v12 = vld [vmem:[#allocation5 + $0x40] sm:$0xff]  ;;  %v77_v14 = vld [vmem:[#allocation5 + $0x38] sm:$0xff]  ;;  %v76_v16 = vld [vmem:[#allocation5 + $0x30] sm:$0xff] }
  0x2b   :  { %344 = vmatpush3.msra.mxu0 %v83_v2  ;;  %376 = vmatprep.subr.mxu1 %v186_v7  ;;  %v181_v17 = vld [vmem:[#allocation7 + $0x48] sm:$0xff]  ;;  %v180_v19 = vld [vmem:[#allocation7 + $0x40] sm:$0xff]  ;;  %v179_v21 = vld [vmem:[#allocation7 + $0x38] sm:$0xff] }
  0x2c   :  { %345 = vmatprep.subr.mxu0 %v82_v3  ;;  %377 = vmatpush3.msra.mxu1 %v186_v7  ;;  %v75_v18 = vld [vmem:[#allocation5 + $0x28] sm:$0xff]  ;;  %v74_v20 = vld [vmem:[#allocation5 + $0x20] sm:$0xff]  ;;  %v73_v22 = vld [vmem:[#allocation5 + $0x18] sm:$0xff] }
  0x2d   :  { %346 = vmatpush3.msra.mxu0 %v82_v3  ;;  %378 = vmatprep.subr.mxu1 %v185_v9  ;;  %v178_v23 = vld [vmem:[#allocation7 + $0x30] sm:$0xff]  ;;  %v177_v25 = vld [vmem:[#allocation7 + $0x28] sm:$0xff]  ;;  %v176_v27 = vld [vmem:[#allocation7 + $0x20] sm:$0xff] }
  0x2e   :  { %347 = vmatprep.subr.mxu0 %v81_v5  ;;  %379 = vmatpush3.msra.mxu1 %v185_v9  ;;  %v72_v24 = vld [vmem:[#allocation5 + $0x10] sm:$0xff]  ;;  %v71_v26 = vld [vmem:[#allocation5 + $0x8] sm:$0xff]  ;;  %v70_v28 = vld [vmem:[#allocation5] sm:$0xff] }
  0x2f   :  { %348 = vmatpush3.msra.mxu0 %v81_v5  ;;  %380 = vmatprep.subr.mxu1 %v184_v11  ;;  %v69_v29 = vld [vmem:[#allocation2 + $0x8] sm:$0xff]  ;;  %v174_v31 = vld [vmem:[#allocation7 + $0x10] sm:$0xff]  ;;  %v173_v32 = vld [vmem:[#allocation7 + $0x8] sm:$0xff] }
  0x30   :  { %349 = vmatprep.subr.mxu0 %v80_v8  ;;  %381 = vmatpush3.msra.mxu1 %v184_v11  ;;  %v175_v30 = vld [vmem:[#allocation7 + $0x18] sm:$0xff]  ;;  %v172_v33 = vld [vmem:[#allocation7] sm:$0xff]  ;;  %v301_v34 = vld [vmem:[%s570_s2] ss:$0 sm:$0xff]  ;;  %s476_s2 = scalar_lea.vmem %s289_s12, 256 }
  0x31   :  { %350 = vmatpush3.msra.mxu0 %v80_v8  ;;  %382 = vmatprep.subr.mxu1 %v183_v13  ;;  %v302_v42 = vld [vmem:[%s572_s4] ss:$0 sm:$0xff]  ;;  %p477_p1 = scmp.ne.s32.totalorder %s289_s12, %s476_s2  ;;  %p482_p3 = scmp.lt.s32.totalorder %s476_s2, %s476_s2 }
  0x32   :  { %351 = vmatprep.subr.mxu0 %v79_v10  ;;  %383 = vmatpush3.msra.mxu1 %v183_v13 }
  0x33   :  { %352 = vmatpush3.msra.mxu0 %v79_v10  ;;  %384 = vmatprep.subr.mxu1 %v182_v15  ;;  %p483_p4 = por %p482_p3, %p481_p2 }
  0x34   :  { %353 = vmatprep.subr.mxu0 %v78_v12  ;;  %385 = vmatpush3.msra.mxu1 %v182_v15 }
  0x35   :  { %354 = vmatpush3.msra.mxu0 %v78_v12  ;;  %386 = vmatprep.subr.mxu1 %v181_v17  ;;  %p484_p5 = pnand %p483_p4, %p477_p1 }
  0x36   :  { %355 = vmatprep.subr.mxu0 %v77_v14  ;;  %387 = vmatpush3.msra.mxu1 %v181_v17 }
  0x37   :  { %356 = vmatpush3.msra.mxu0 %v77_v14  ;;  %388 = vmatprep.subr.mxu1 %v180_v19 }
  0x38   :  { %357 = vmatprep.subr.mxu0 %v76_v16  ;;  %389 = vmatpush3.msra.mxu1 %v180_v19 }
  0x39   :  { %358 = vmatpush3.msra.mxu0 %v76_v16  ;;  %390 = vmatprep.subr.mxu1 %v179_v21 }
  0x3a   :  { %359 = vmatprep.subr.mxu0 %v75_v18  ;;  %391 = vmatpush3.msra.mxu1 %v179_v21 }
  0x3b   :  { %360 = vmatpush3.msra.mxu0 %v75_v18  ;;  %392 = vmatprep.subr.mxu1 %v178_v23 }
  0x3c   :  { %361 = vmatprep.subr.mxu0 %v74_v20  ;;  %393 = vmatpush3.msra.mxu1 %v178_v23 }
  0x3d   :  { %362 = vmatpush3.msra.mxu0 %v74_v20  ;;  %394 = vmatprep.subr.mxu1 %v177_v25 }
  0x3e   :  { %363 = vmatprep.subr.mxu0 %v73_v22  ;;  %395 = vmatpush3.msra.mxu1 %v177_v25 }
  0x3f   :  { %364 = vmatpush3.msra.mxu0 %v73_v22  ;;  %396 = vmatprep.subr.mxu1 %v176_v27 }
  0x40   :  { %365 = vmatprep.subr.mxu0 %v72_v24  ;;  %397 = vmatpush3.msra.mxu1 %v176_v27 }
  0x41   :  { %366 = vmatpush3.msra.mxu0 %v72_v24  ;;  %398 = vmatprep.subr.mxu1 %v175_v30 }
  0x42   :  { %367 = vmatprep.subr.mxu0 %v71_v26  ;;  %399 = vmatpush3.msra.mxu1 %v175_v30 }
  0x43   :  { %368 = vmatpush3.msra.mxu0 %v71_v26  ;;  %400 = vmatprep.subr.mxu1 %v174_v31 }
  0x44   :  { %369 = vmatprep.subr.mxu0 %v70_v28  ;;  %401 = vmatpush3.msra.mxu1 %v174_v31 }
  0x45   :  { %370 = vmatpush3.msra.mxu0 %v70_v28  ;;  %402 = vmatprep.subr.mxu1 %v173_v32 }
  0x46   :  { %372 = vmatmul.mubr.f32.vlgmr.msra.gmra.mxu0 %v69_v29  ;;  %403 = vmatpush3.msra.mxu1 %v173_v32 }
  0x47   :  { %404 = vmatprep.subr.mxu1 %v172_v33 }
  0x48   :  { %405 = vmatpush3.msra.mxu1 %v172_v33 }
 0x106   :  { %v373_v35 = vpop.f32.mrf.mxu0 }
 0x107   :  { %v165_v36 = vadd.f32 %v373_v35, %v301_v34 }
 0x108   :  { %v159_v37 = vpop.f32.mrf.mxu0 }
 0x109   :  { %v160_v38 = vadd.f32 %v301_v34, %v159_v37  ;;  %v169_v40 = vmax.f32 %v165_v36, 0.0 }
 0x10b   :  { %v168_v39 = vmax.f32 %v160_v38, 0.0 }
 0x10d   :  { %406 = vmatprep.mubr.f32.mxu1 %v168_v39 }
 0x10e   :  { %407 = vmatmul.mubr.f32.vlgmr.msra.gmra.mxu1 %v169_v40 }
 0x1ce   :  { %v408_v41 = vpop.f32.mrf.mxu1 }
 0x1cf   :  { %v280_v44 = vadd.f32 %v408_v41, %v302_v42 }
 0x1d0   :  { %v254_v43 = vpop.f32.mrf.mxu1 }
 0x1d1   :  { %v279_v45 = vadd.f32 %v302_v42, %v254_v43  ;;  %282 = vst [vmem:[#allocation8 + $0x8] sm:$0xff] %v280_v44 }
 0x1d3   :  { %281 = vst [vmem:[#allocation8] sm:$0xff] %v279_v45 }
 0x1d4   :  { %487 = shalt.err (!%p484_p5)
}
 0x1d5   :  { %294 = dma.vmem_to_hbm [thread:$0]  %s289_s12, 256, %s573_s5, [#allocation4], %s504_s23, %s504_s23, %s505_s24  }
 0x1d6   :  { %500 = dma.done.wait [#allocation4], 256  }
 0x1d7   :  { %501 = vsyncadd [#allocation4], 4294967040 }
 0x1d8   :  { %298 = vsyncpa [#allocation3], 1 }
 0x1d9   :  { %299 = vsyncpa [#allocation6], 1 }
 0x1da   :  { %300 = vsyncpa [#allocation4], 1 }

</bundles_post_ra>
